<compile_context>
chip_gen: v6e
topology: v6e:2x2x1
jax: 0.10.0
libtpu: 0.0.40
codegen_flags: <defaults>
</compile_context>

<pallas_src>
import functools

import jax
import jax.numpy as jnp
from jax.experimental import pallas as pl
from jax.experimental.pallas import tpu as pltpu


def _round_up(n, m):
    return ((n + m - 1) // m) * m


def _pad2d(a, rows, cols):
    out = jnp.zeros((rows, cols), a.dtype)
    return out.at[: a.shape[0], : a.shape[1]].set(a)


def init_params(key, state_dim, action_dim):
    """PyTorch-style Linear params, stored as (in, out) weights, (1, out) biases."""
    ks = jax.random.split(key, 6)

    def lin(kw, kb, fan_in, fan_out):
        # uniform(-1/sqrt(fan_in), 1/sqrt(fan_in)) like PyTorch's default init
        bound = 1.0 / jnp.sqrt(jnp.float32(fan_in))
        w = jax.random.uniform(kw, (fan_in, fan_out), jnp.float32, -bound, bound)
        b = jax.random.uniform(kb, (1, fan_out), jnp.float32, -bound, bound)
        return w, b

    w1, b1 = lin(ks[0], ks[1], state_dim, 300)
    w2, b2 = lin(ks[2], ks[3], 300, 100)
    w3, b3 = lin(ks[4], ks[5], 100, action_dim)
    return (w1, b1, w2, b2, w3, b3)


def prepare_params(params, matmul_dtype=jnp.float32):
    """Pad all feature dims to multiples of 128 (dense vregs / lane-dense output
    store), cast weights to the matmul dtype (bf16 on v6e/v7x halves weight DMA
    and hits the native bf16 MXU path), and fuse the three biases into a single
    f32 array (one DMA instead of three)."""
    w1, b1, w2, b2, w3, b3 = params
    state_dim, h1 = w1.shape
    _, h2 = w2.shape
    _, action_dim = w3.shape

    sp = _round_up(state_dim, 128)    # 16  -> 128
    h1p = _round_up(h1, 128)          # 300 -> 384
    h2p = _round_up(h2, 128)          # 100 -> 128
    ap = _round_up(action_dim, 128)   # 4   -> 128

    w1p = _pad2d(w1, sp, h1p).astype(matmul_dtype)
    w2p = _pad2d(w2, h1p, h2p).astype(matmul_dtype)
    w3p = _pad2d(w3, h2p, ap).astype(matmul_dtype)
    b_cat = jnp.concatenate(
        [_pad2d(b1, 1, h1p), _pad2d(b2, 1, h2p), _pad2d(b3, 1, ap)], axis=1
    ).astype(jnp.float32)

    dims = dict(state_dim=state_dim, action_dim=action_dim,
                sp=sp, h1p=h1p, h2p=h2p, ap=ap)
    return (w1p, w2p, w3p, b_cat), dims


def _mlp_kernel(x_ref, w1_ref, w2_ref, w3_ref, b_ref, o_ref, *, h1p, h2p):
    """Fused 3-layer MLP on one (tile_b, *) batch tile. Matmuls accumulate in
    f32 on the MXU; bias add + tanh stay in f32 (safe on v5e); activations are
    cast back to the weight dtype before the next matmul."""
    mm_dtype = w1_ref.dtype
    b1 = b_ref[:, :h1p]
    b2 = b_ref[:, h1p:h1p + h2p]
    b3 = b_ref[:, h1p + h2p:]

    x = x_ref[...]
    h1 = jnp.tanh(
        jnp.dot(x, w1_ref[...], preferred_element_type=jnp.float32) + b1)
    h2 = jnp.tanh(
        jnp.dot(h1.astype(mm_dtype), w2_ref[...],
                preferred_element_type=jnp.float32) + b2)
    out = jnp.dot(h2.astype(mm_dtype), w3_ref[...],
                  preferred_element_type=jnp.float32) + b3
    o_ref[...] = out.astype(o_ref.dtype)


def model_forward(x, prepared, *, tile_b=None):
    """y = (tanh(x@W1+b1) -> tanh(@W2+b2) -> @W3+b3) as one Pallas call,
    gridded over the batch: weights are fetched once and stay VMEM-resident
    (constant index_map) while batch tiles stream through."""
    (w1p, w2p, w3p, b_cat), dims = prepared
    batch, state_dim = x.shape
    sp, h1p, h2p, ap = dims["sp"], dims["h1p"], dims["h2p"], dims["ap"]
    action_dim = dims["action_dim"]
    mm_dtype = w1p.dtype

    if tile_b is None:
        # Large enough to amortize the ~0.35 us/step pipeline overhead, small
        # enough to stay well inside v7x's 64 MiB VMEM (per-row working set is
        # only a few KB f32), so no vmem_limit_bytes override is needed.
        tile_b = min(512, _round_up(batch, 8))
    b_pad = _round_up(batch, tile_b)

    xp = jnp.zeros((b_pad, sp), mm_dtype).at[:batch, :state_dim].set(
        x.astype(mm_dtype))

    kernel = functools.partial(_mlp_kernel, h1p=h1p, h2p=h2p)

    bytes_per = jnp.dtype(mm_dtype).itemsize
    cost = pl.CostEstimate(
        flops=2 * b_pad * (sp * h1p + h1p * h2p + h2p * ap),
        transcendentals=b_pad * (h1p + h2p),
        bytes_accessed=(w1p.size + w2p.size + w3p.size) * bytes_per
        + b_cat.size * 4 + xp.size * bytes_per + b_pad * ap * 4,
    )

    out = pl.pallas_call(
        kernel,
        out_shape=jax.ShapeDtypeStruct((b_pad, ap), jnp.float32),
        grid=(b_pad // tile_b,),
        in_specs=[
            pl.BlockSpec((tile_b, sp), lambda i: (i, 0)),         # x tile streams
            pl.BlockSpec((sp, h1p), lambda i: (0, 0)),            # weights stay
            pl.BlockSpec((h1p, h2p), lambda i: (0, 0)),           #   resident in
            pl.BlockSpec((h2p, ap), lambda i: (0, 0)),            #   VMEM
            pl.BlockSpec((1, h1p + h2p + ap), lambda i: (0, 0)),  # fused biases
        ],
        out_specs=pl.BlockSpec((tile_b, ap), lambda i: (i, 0)),
        compiler_params=pltpu.CompilerParams(
            dimension_semantics=("parallel",)),
        cost_estimate=cost,
    )(xp, w1p, w2p, w3p, b_cat)

    return out[:batch, :action_dim]


def reference_forward(x, params):
    w1, b1, w2, b2, w3, b3 = params
    h1 = jnp.tanh(x @ w1 + b1)
    h2 = jnp.tanh(h1 @ w2 + b2)
    return h2 @ w3 + b3


if __name__ == "__main__":
    state_dim = 16
    action_dim = 4

    key = jax.random.PRNGKey(0)
    kx, kp, kx2 = jax.random.split(key, 3)
    params = init_params(kp, state_dim, action_dim)

    # Small batch, f32 path: bit-accurate vs. the reference.
    x_small = jax.random.normal(kx, (8, state_dim), jnp.float32)
    prepared_f32 = prepare_params(params, jnp.float32)
    out_f32 = jax.block_until_ready(model_forward(x_small, prepared_f32))
    ref_small = reference_forward(x_small, params)
    assert out_f32.shape == (8, action_dim)
    assert jnp.allclose(out_f32, ref_small, atol=1e-5, rtol=1e-5)

    # Replay-sized batch, bf16 matmul path (f32 accumulation + f32 tanh),
    # tiled over the batch so the grid has multiple parallel steps.
    x_batch = jax.random.normal(kx2, (256, state_dim), jnp.float32)
    prepared_bf16 = prepare_params(params, jnp.bfloat16)
    out_bf16 = jax.block_until_ready(
        model_forward(x_batch, prepared_bf16, tile_b=128))
    ref_batch = reference_forward(x_batch, params)
    assert out_bf16.shape == (256, action_dim)
    assert jnp.allclose(out_bf16, ref_batch, atol=5e-2, rtol=5e-2)

    print("KERNEL_OK")
</pallas_src>

<mosaic_0001>
module attributes {stable_mosaic.version = 11 : i64} {
  func.func @_mlp_kernel(%arg0: i32, %arg1: memref<8x128xf32, #tpu.memory_space<vmem>>, %arg2: memref<128x384xf32, #tpu.memory_space<vmem>>, %arg3: memref<384x128xf32, #tpu.memory_space<vmem>>, %arg4: memref<128x128xf32, #tpu.memory_space<vmem>>, %arg5: memref<1x640xf32, #tpu.memory_space<vmem>>, %arg6: memref<8x128xf32, #tpu.memory_space<vmem>>) attributes {dimension_semantics = [#tpu.dimension_semantics<parallel>], iteration_bounds = array<i64: 1>, scalar_prefetch = 0 : i64, scratch_operands = 0 : i64, tpu.core_type = #tpu.core_type<tc>, window_params = [{transform_indices = @transform_0, window_bounds = array<i64: 8, 128>}, {pipeline_mode = #tpu.pipeline_mode<synchronous>, transform_indices = @transform_1, window_bounds = array<i64: 128, 384>}, {pipeline_mode = #tpu.pipeline_mode<synchronous>, transform_indices = @transform_2, window_bounds = array<i64: 384, 128>}, {pipeline_mode = #tpu.pipeline_mode<synchronous>, transform_indices = @transform_3, window_bounds = array<i64: 128, 128>}, {pipeline_mode = #tpu.pipeline_mode<synchronous>, transform_indices = @transform_4, window_bounds = array<i64: 1, 640>}, {transform_indices = @transform_5, window_bounds = array<i64: 8, 128>}]} {
    %c0 = arith.constant 0 : index
    %c0_0 = arith.constant 0 : index
    %0 = vector.load %arg5[%c0, %c0_0] : memref<1x640xf32, #tpu.memory_space<vmem>>, vector<1x384xf32>
    %c0_1 = arith.constant 0 : index
    %c384 = arith.constant 384 : index
    %1 = vector.load %arg5[%c0_1, %c384] : memref<1x640xf32, #tpu.memory_space<vmem>>, vector<1x128xf32>
    %c0_2 = arith.constant 0 : index
    %c512 = arith.constant 512 : index
    %2 = vector.load %arg5[%c0_2, %c512] : memref<1x640xf32, #tpu.memory_space<vmem>>, vector<1x128xf32>
    %c0_3 = arith.constant 0 : index
    %c0_4 = arith.constant 0 : index
    %3 = vector.load %arg1[%c0_3, %c0_4] : memref<8x128xf32, #tpu.memory_space<vmem>>, vector<8x128xf32>
    %c0_5 = arith.constant 0 : index
    %c0_6 = arith.constant 0 : index
    %4 = vector.load %arg2[%c0_5, %c0_6] : memref<128x384xf32, #tpu.memory_space<vmem>>, vector<128x384xf32>
    %cst = arith.constant dense<0.000000e+00> : vector<8x384xf32>
    %5 = tpu.matmul %3, %4, %cst {dimension_numbers = #tpu.dot_dimension_numbers<[1], [0], [0], [1], [0, 0, 1, 1], [], []>} : vector<8x128xf32>, vector<128x384xf32>, vector<8x384xf32> -> vector<8x384xf32>
    %6 = vector.broadcast %0 : vector<1x384xf32> to vector<8x384xf32>
    %7 = arith.addf %5, %6 : vector<8x384xf32>
    %8 = math.tanh %7 : vector<8x384xf32>
    %c0_7 = arith.constant 0 : index
    %c0_8 = arith.constant 0 : index
    %9 = vector.load %arg3[%c0_7, %c0_8] : memref<384x128xf32, #tpu.memory_space<vmem>>, vector<384x128xf32>
    %cst_9 = arith.constant dense<0.000000e+00> : vector<8x128xf32>
    %10 = tpu.matmul %8, %9, %cst_9 {dimension_numbers = #tpu.dot_dimension_numbers<[1], [0], [0], [1], [0, 0, 1, 1], [], []>} : vector<8x384xf32>, vector<384x128xf32>, vector<8x128xf32> -> vector<8x128xf32>
    %11 = vector.broadcast %1 : vector<1x128xf32> to vector<8x128xf32>
    %12 = arith.addf %10, %11 : vector<8x128xf32>
    %13 = math.tanh %12 : vector<8x128xf32>
    %c0_10 = arith.constant 0 : index
    %c0_11 = arith.constant 0 : index
    %14 = vector.load %arg4[%c0_10, %c0_11] : memref<128x128xf32, #tpu.memory_space<vmem>>, vector<128x128xf32>
    %cst_12 = arith.constant dense<0.000000e+00> : vector<8x128xf32>
    %15 = tpu.matmul %13, %14, %cst_12 {dimension_numbers = #tpu.dot_dimension_numbers<[1], [0], [0], [1], [0, 0, 1, 1], [], []>} : vector<8x128xf32>, vector<128x128xf32>, vector<8x128xf32> -> vector<8x128xf32>
    %16 = vector.broadcast %2 : vector<1x128xf32> to vector<8x128xf32>
    %17 = arith.addf %15, %16 : vector<8x128xf32>
    %c0_13 = arith.constant 0 : index
    %c0_14 = arith.constant 0 : index
    %18 = vector.load %arg6[%c0_13, %c0_14] : memref<8x128xf32, #tpu.memory_space<vmem>>, vector<8x128xf32>
    tpu.vector_store %arg6[%c0_13, %c0_14], %17 {strides = array<i32>} : memref<8x128xf32, #tpu.memory_space<vmem>>, vector<8x128xf32>,
    return
  }
  func.func @transform_0(%arg0: i32) -> (i32, i32) {
    %c0_i32 = arith.constant 0 : i32
    %c0_i32_0 = arith.constant 0 : i32
    return %arg0, %c0_i32 : i32, i32
  }
  func.func @transform_1(%arg0: i32) -> (i32, i32) {
    %c0_i32 = arith.constant 0 : i32
    %c0_i32_0 = arith.constant 0 : i32
    %c0_i32_1 = arith.constant 0 : i32
    return %c0_i32, %c0_i32_0 : i32, i32
  }
  func.func @transform_2(%arg0: i32) -> (i32, i32) {
    %c0_i32 = arith.constant 0 : i32
    %c0_i32_0 = arith.constant 0 : i32
    %c0_i32_1 = arith.constant 0 : i32
    return %c0_i32, %c0_i32_0 : i32, i32
  }
  func.func @transform_3(%arg0: i32) -> (i32, i32) {
    %c0_i32 = arith.constant 0 : i32
    %c0_i32_0 = arith.constant 0 : i32
    %c0_i32_1 = arith.constant 0 : i32
    return %c0_i32, %c0_i32_0 : i32, i32
  }
  func.func @transform_4(%arg0: i32) -> (i32, i32) {
    %c0_i32 = arith.constant 0 : i32
    %c0_i32_0 = arith.constant 0 : i32
    %c0_i32_1 = arith.constant 0 : i32
    return %c0_i32, %c0_i32_0 : i32, i32
  }
  func.func @transform_5(%arg0: i32) -> (i32, i32) {
    %c0_i32 = arith.constant 0 : i32
    %c0_i32_0 = arith.constant 0 : i32
    return %arg0, %c0_i32 : i32, i32
  }
}

</mosaic_0001>

<bundles_post_ra>
// kernel: tpu_custom_call.1
= control target key start
LH: loop header
LB: loop body
LE: loop exit
PB: predicated region body
PF: predicated region fallthrough
CT: control target
= control target key end

     0   :  { %10 = vsyncpa [#allocation3], 0  ;;  %s1031_s0 = inlined_call_operand.hbm [shape: f32[8,128], index: 0, kind: input, shape index: {}]   ;;  %s1032_s1 = inlined_call_operand.hbm [shape: f32[128,384], index: 1, kind: input, shape index: {}]   ;;  %s1033_s2 = inlined_call_operand.hbm [shape: f32[384,128], index: 2, kind: input, shape index: {}]   ;;  %s1034_s3 = inlined_call_operand.hbm [shape: f32[128,128], index: 3, kind: input, shape index: {}]   ;;  %s1035_s4 = inlined_call_operand.vmem [shape: f32[1,640], index: 4, kind: input, shape index: {}]   ;;  %s1036_s5 = inlined_call_operand.hbm [shape: f32[8,128], index: 5, kind: output, shape index: {}]  }
   0x1   :  { %11 = vsyncpa [#allocation6], 0 }
   0x2   :  { %12 = vsyncpa [#allocation9], 0 }
   0x3   :  { %13 = vsyncpa [#allocation4], 0  ;;  %s911_s18 = smov [#allocation5]  }
   0x4   :  { %s29_s19 = sshll.u32 %s911_s18, 4  ;;  %s30_s19 = int_to_ptr.vmem [resolvable:$true] %s29_s19 }
   0x5   :  { %s811_s20 = scalar_lea.vmem %s30_s19, 6144  ;;  %p816_p1 = scmp.lt.s32.totalorder %s30_s19, %s30_s19 }
   0x6   :  { %p812_p0 = scmp.ne.s32.totalorder %s30_s19, %s811_s20  ;;  %p817_p2 = scmp.lt.s32.totalorder %s811_s20, %s811_s20 }
   0x8   :  { %p818_p3 = por %p817_p2, %p816_p1 }
   0xa   :  { %p819_p4 = pnand %p818_p3, %p812_p0 }
   0xc   :  { %822 = shalt.err (!%p819_p4)
}
   0xd   :  { %s912_s21 = smov 384   ;;  %s913_s22 = smov 24  }
   0xe   :  { %35 = dma.hbm_to_vmem [thread:$0]  %s1032_s1, 6144, %s30_s19, [#allocation6], %s912_s21, %s912_s21, %s913_s22  }
   0xf   :  { %s914_s25 = smov [#allocation2]   ;;  %s915_s27 = smov [#allocation7]  }
  0x10   :  { %s20_s26 = sshll.u32 %s914_s25, 4  ;;  %s41_s28 = sshll.u32 %s915_s27, 4  ;;  %s21_s26 = int_to_ptr.vmem [resolvable:$true] %s20_s26  ;;  %s42_s28 = int_to_ptr.vmem [resolvable:$true] %s41_s28 }
  0x11   :  { %s831_s29 = scalar_lea.vmem %s21_s26, 128  ;;  %p836_p6 = scmp.lt.s32.totalorder %s21_s26, %s21_s26 }
  0x12   :  { %p832_p5 = scmp.ne.s32.totalorder %s21_s26, %s831_s29  ;;  %p837_p7 = scmp.lt.s32.totalorder %s831_s29, %s831_s29 }
  0x14   :  { %p838_p8 = por %p837_p7, %p836_p6 }
  0x16   :  { %p839_p9 = pnand %p838_p8, %p832_p5 }
  0x18   :  { %842 = shalt.err (!%p839_p9)
}
  0x19   :  { %23 = dma.hbm_to_vmem [thread:$0]  %s1031_s0, 128, %s21_s26, [#allocation3]  }
  0x1a   :  { %s851_s7 = scalar_lea.vmem %s42_s28, 6144  ;;  %p856_p11 = scmp.lt.s32.totalorder %s42_s28, %s42_s28 }
  0x1b   :  { %p852_p10 = scmp.ne.s32.totalorder %s42_s28, %s851_s7  ;;  %p857_p12 = scmp.lt.s32.totalorder %s851_s7, %s851_s7 }
  0x1d   :  { %p858_p13 = por %p857_p12, %p856_p11 }
  0x1f   :  { %p859_p0 = pnand %p858_p13, %p852_p10 }
  0x21   :  { %862 = shalt.err (!%p859_p0)
}
  0x22   :  { %s916_s1 = smov 128   ;;  %s917_s8 = smov 8  }
  0x23   :  { %47 = dma.hbm_to_vmem [thread:$0]  %s1033_s2, 6144, %s42_s28, [#allocation6], %s916_s1, %s916_s1, %s917_s8  }
  0x24   :  { %s918_s11 = smov [#allocation8]  }
  0x25   :  { %s53_s12 = sshll.u32 %s918_s11, 4  ;;  %s54_s12 = int_to_ptr.vmem [resolvable:$true] %s53_s12 }
  0x26   :  { %s871_s13 = scalar_lea.vmem %s54_s12, 2048  ;;  %p876_p2 = scmp.lt.s32.totalorder %s54_s12, %s54_s12 }
  0x27   :  { %p872_p1 = scmp.ne.s32.totalorder %s54_s12, %s871_s13  ;;  %p877_p3 = scmp.lt.s32.totalorder %s871_s13, %s871_s13 }
  0x29   :  { %p878_p4 = por %p877_p3, %p876_p2 }
  0x2b   :  { %p879_p5 = pnand %p878_p4, %p872_p1 }
  0x2d   :  { %882 = shalt.err (!%p879_p5)
}
  0x2e   :  { %59 = dma.hbm_to_vmem [thread:$0]  %s1034_s3, 2048, %s54_s12, [#allocation9], %s916_s1, %s916_s1, %s917_s8  }
  0x2f   :  { %903 = dma.done.wait [#allocation3], 128  }
  0x30   :  { %904 = vsyncadd [#allocation3], 4294967168 }
  0x31   :  { %905 = dma.done.wait [#allocation6], 12288  }
  0x32   :  { %906 = vsyncadd [#allocation6], 4294955008 }
  0x33   :  { %907 = dma.done.wait [#allocation9], 2048  }
  0x34   :  { %908 = vsyncadd [#allocation9], 4294965248  ;;  %v919_v0 = vmov 0.0   ;;  %vm920_vm0 = vmmov 0   ;;  %v124_v1 = vld [vmem:[#allocation5 + $0x170] sm:$0xff]  ;;  %v123_v2 = vld [vmem:[#allocation5 + $0x168] sm:$0xff] }
  0x35   :  { %679 = vmatprep.subr.mxu1 %v919_v0  ;;  %206 = vmatprep.mubr.f32.mxu0 %v919_v0  ;;  %v121_v3 = vld [vmem:[#allocation5 + $0x158] sm:$0xff]  ;;  %v120_v4 = vld [vmem:[#allocation5 + $0x150] sm:$0xff]  ;;  %v118_v5 = vld [vmem:[#allocation5 + $0x140] sm:$0xff]  ;;  %s921_s19 = smov [#allocation10]  }
  0x36   :  { %711 = vmatprep.mubr.msk.f32.mxu1 %vm920_vm0, %v919_v0  ;;  %142 = vmatprep.subr.mxu0 %v124_v1  ;;  %v117_v6 = vld [vmem:[#allocation5 + $0x138] sm:$0xff]  ;;  %v115_v8 = vld [vmem:[#allocation5 + $0x128] sm:$0xff]  ;;  %v122_v9 = vld [vmem:[#allocation5 + $0x160] sm:$0xff]  ;;  %s580_s20 = sshll.u32 %s921_s19, 4  ;;  %s581_s20 = int_to_ptr.vmem [resolvable:$true] %s580_s20 }
  0x37   :  { %143 = vmatpush1.msra.mxu0 %v123_v2  ;;  %v125_v7 = vld [vmem:[#allocation5 + $0x178] sm:$0xff]  ;;  %v114_v10 = vld [vmem:[#allocation5 + $0x120] sm:$0xff]  ;;  %v119_v11 = vld [vmem:[#allocation5 + $0x148] sm:$0xff]  ;;  %s883_s21 = scalar_lea.vmem %s581_s20, 128  ;;  %p888_p7 = scmp.lt.s32.totalorder %s581_s20, %s581_s20 }
  0x38   :  { %144 = vmatprep.subr.mxu0 %v121_v3  ;;  %680 = vmatpush3.msra.mxu1 %v125_v7  ;;  %v112_v12 = vld [vmem:[#allocation5 + $0x110] sm:$0xff]  ;;  %v111_v13 = vld [vmem:[#allocation5 + $0x108] sm:$0xff]  ;;  %v109_v15 = vld [vmem:[#allocation5 + $0xf8] sm:$0xff]  ;;  %p884_p6 = scmp.ne.s32.totalorder %s581_s20, %s883_s21  ;;  %p889_p8 = scmp.lt.s32.totalorder %s883_s21, %s883_s21 }
  0x39   :  { %145 = vmatpush1.msra.mxu0 %v120_v4  ;;  %681 = vmatprep.subr.mxu1 %v919_v0  ;;  %v116_v14 = vld [vmem:[#allocation5 + $0x130] sm:$0xff]  ;;  %v113_v17 = vld [vmem:[#allocation5 + $0x118] sm:$0xff]  ;;  %v106_v18 = vld [vmem:[#allocation5 + $0xe0] sm:$0xff] }
  0x3a   :  { %146 = vmatprep.subr.mxu0 %v118_v5  ;;  %682 = vmatpush3.msra.mxu1 %v122_v9  ;;  %v108_v16 = vld [vmem:[#allocation5 + $0xf0] sm:$0xff]  ;;  %v105_v19 = vld [vmem:[#allocation5 + $0xd8] sm:$0xff]  ;;  %v110_v20 = vld [vmem:[#allocation5 + $0x100] sm:$0xff]  ;;  %p890_p9 = por %p889_p8, %p888_p7 }
  0x3b   :  { %147 = vmatpush1.msra.mxu0 %v117_v6  ;;  %683 = vmatprep.subr.mxu1 %v919_v0  ;;  %v103_v21 = vld [vmem:[#allocation5 + $0xc8] sm:$0xff]  ;;  %v102_v22 = vld [vmem:[#allocation5 + $0xc0] sm:$0xff]  ;;  %v100_v24 = vld [vmem:[#allocation5 + $0xb0] sm:$0xff] }
  0x3c   :  { %148 = vmatprep.subr.mxu0 %v115_v8  ;;  %684 = vmatpush3.msra.mxu1 %v119_v11  ;;  %v107_v23 = vld [vmem:[#allocation5 + $0xe8] sm:$0xff]  ;;  %v104_v26 = vld [vmem:[#allocation5 + $0xd0] sm:$0xff]  ;;  %v97_v27 = vld [vmem:[#allocation5 + $0x98] sm:$0xff]  ;;  %p891_p10 = pnand %p890_p9, %p884_p6 }
  0x3d   :  { %149 = vmatpush1.msra.mxu0 %v114_v10  ;;  %685 = vmatprep.subr.mxu1 %v919_v0  ;;  %v99_v25 = vld [vmem:[#allocation5 + $0xa8] sm:$0xff]  ;;  %v96_v28 = vld [vmem:[#allocation5 + $0x90] sm:$0xff]  ;;  %v101_v29 = vld [vmem:[#allocation5 + $0xb8] sm:$0xff] }
  0x3e   :  { %150 = vmatprep.subr.mxu0 %v112_v12  ;;  %686 = vmatpush3.msra.mxu1 %v116_v14  ;;  %v94_v30 = vld [vmem:[#allocation5 + $0x80] sm:$0xff]  ;;  %v93_v31 = vld [vmem:[#allocation5 + $0x78] sm:$0xff]  ;;  %v91_v33 = vld [vmem:[#allocation5 + $0x68] sm:$0xff] }
  0x3f   :  { %151 = vmatpush1.msra.mxu0 %v111_v13  ;;  %687 = vmatprep.subr.mxu1 %v919_v0  ;;  %v98_v32 = vld [vmem:[#allocation5 + $0xa0] sm:$0xff]  ;;  %v95_v35 = vld [vmem:[#allocation5 + $0x88] sm:$0xff]  ;;  %v88_v36 = vld [vmem:[#allocation5 + $0x50] sm:$0xff] }
  0x40   :  { %152 = vmatprep.subr.mxu0 %v109_v15  ;;  %688 = vmatpush3.msra.mxu1 %v113_v17  ;;  %v90_v34 = vld [vmem:[#allocation5 + $0x60] sm:$0xff]  ;;  %v87_v37 = vld [vmem:[#allocation5 + $0x48] sm:$0xff]  ;;  %v92_v38 = vld [vmem:[#allocation5 + $0x70] sm:$0xff] }
  0x41   :  { %153 = vmatpush1.msra.mxu0 %v108_v16  ;;  %689 = vmatprep.subr.mxu1 %v919_v0  ;;  %v85_v39 = vld [vmem:[#allocation5 + $0x38] sm:$0xff]  ;;  %v84_v40 = vld [vmem:[#allocation5 + $0x30] sm:$0xff]  ;;  %v82_v42 = vld [vmem:[#allocation5 + $0x20] sm:$0xff] }
  0x42   :  { %154 = vmatprep.subr.mxu0 %v106_v18  ;;  %690 = vmatpush3.msra.mxu1 %v110_v20  ;;  %v89_v41 = vld [vmem:[#allocation5 + $0x58] sm:$0xff]  ;;  %v86_v44 = vld [vmem:[#allocation5 + $0x40] sm:$0xff]  ;;  %v79_v45 = vld [vmem:[#allocation5 + $0x8] sm:$0xff] }
  0x43   :  { %155 = vmatpush1.msra.mxu0 %v105_v19  ;;  %691 = vmatprep.subr.mxu1 %v919_v0  ;;  %v81_v43 = vld [vmem:[#allocation5 + $0x18] sm:$0xff]  ;;  %v78_v46 = vld [vmem:[#allocation5] sm:$0xff]  ;;  %v83_v47 = vld [vmem:[#allocation5 + $0x28] sm:$0xff] }
  0x44   :  { %156 = vmatprep.subr.mxu0 %v103_v21  ;;  %692 = vmatpush3.msra.mxu1 %v107_v23  ;;  %v77_v48 = vld [vmem:[#allocation2] sm:$0xff]  ;;  %v80_v49 = vld [vmem:[#allocation5 + $0x10] sm:$0xff]  ;;  %v315_v55 = vld [vmem:[#allocation7 + $0xe8] sm:$0xff] }
  0x45   :  { %157 = vmatpush1.msra.mxu0 %v102_v22  ;;  %693 = vmatprep.subr.mxu1 %v919_v0  ;;  %v317_v50 = vld [vmem:[#allocation7 + $0xf8] sm:$0xff]  ;;  %v316_v52 = vld [vmem:[#allocation7 + $0xf0] sm:$0xff]  ;;  %v299_v56 = vld [vmem:[#allocation7 + $0x68] sm:$0xff] }
  0x46   :  { %158 = vmatprep.subr.mxu0 %v100_v24  ;;  %694 = vmatpush3.msra.mxu1 %v104_v26  ;;  %v301_v51 = vld [vmem:[#allocation7 + $0x78] sm:$0xff]  ;;  %v300_v53 = vld [vmem:[#allocation7 + $0x70] sm:$0xff]  ;;  %v314_v58 = vld [vmem:[#allocation7 + $0xe0] sm:$0xff] }
  0x47   :  { %159 = vmatpush1.msra.mxu0 %v99_v25  ;;  %695 = vmatprep.subr.mxu1 %v919_v0  ;;  %v333_v54 = vld [vmem:[#allocation7 + $0x178] sm:$0xff]  ;;  %v332_v57 = vld [vmem:[#allocation7 + $0x170] sm:$0xff]  ;;  %v298_v59 = vld [vmem:[#allocation7 + $0x60] sm:$0xff] }
  0x48   :  { %160 = vmatprep.subr.mxu0 %v97_v27  ;;  %696 = vmatpush3.msra.mxu1 %v101_v29  ;;  %v331_v60 = vld [vmem:[#allocation7 + $0x168] sm:$0xff]  ;;  %v313_v61 = vld [vmem:[#allocation7 + $0xd8] sm:$0xff]  ;;  %v330_v63 = vld [vmem:[#allocation7 + $0x160] sm:$0xff] }
  0x49   :  { %161 = vmatpush1.msra.mxu0 %v96_v28  ;;  %697 = vmatprep.subr.mxu1 %v919_v0  ;;  %v297_v62 = vld [vmem:[#allocation7 + $0x58] sm:$0xff]  ;;  %v312_v1 = vld [vmem:[#allocation7 + $0xd0] sm:$0xff]  ;;  %v311_v3 = vld [vmem:[#allocation7 + $0xc8] sm:$0xff] }
  0x4a   :  { %162 = vmatprep.subr.mxu0 %v94_v30  ;;  %698 = vmatpush3.msra.mxu1 %v98_v32  ;;  %v296_v2 = vld [vmem:[#allocation7 + $0x50] sm:$0xff]  ;;  %v295_v4 = vld [vmem:[#allocation7 + $0x48] sm:$0xff]  ;;  %v329_v5 = vld [vmem:[#allocation7 + $0x158] sm:$0xff] }
  0x4b   :  { %163 = vmatpush1.msra.mxu0 %v93_v31  ;;  %699 = vmatprep.subr.mxu1 %v919_v0  ;;  %v310_v6 = vld [vmem:[#allocation7 + $0xc0] sm:$0xff]  ;;  %v328_v8 = vld [vmem:[#allocation7 + $0x150] sm:$0xff]  ;;  %v309_v9 = vld [vmem:[#allocation7 + $0xb8] sm:$0xff] }
  0x4c   :  { %164 = vmatprep.subr.mxu0 %v91_v33  ;;  %700 = vmatpush3.msra.mxu1 %v95_v35  ;;  %v294_v7 = vld [vmem:[#allocation7 + $0x40] sm:$0xff]  ;;  %v293_v10 = vld [vmem:[#allocation7 + $0x38] sm:$0xff]  ;;  %v327_v11 = vld [vmem:[#allocation7 + $0x148] sm:$0xff]  ;;  %v127_v35 = vlaneseq }
  0x4d   :  { %165 = vmatpush1.msra.mxu0 %v90_v34  ;;  %701 = vmatprep.subr.mxu1 %v919_v0  ;;  %v308_v12 = vld [vmem:[#allocation7 + $0xb0] sm:$0xff]  ;;  %v326_v14 = vld [vmem:[#allocation7 + $0x140] sm:$0xff]  ;;  %v307_v15 = vld [vmem:[#allocation7 + $0xa8] sm:$0xff] }
  0x4e   :  { %166 = vmatprep.subr.mxu0 %v88_v36  ;;  %702 = vmatpush3.msra.mxu1 %v92_v38  ;;  %v292_v13 = vld [vmem:[#allocation7 + $0x30] sm:$0xff]  ;;  %v291_v16 = vld [vmem:[#allocation7 + $0x28] sm:$0xff]  ;;  %v325_v17 = vld [vmem:[#allocation7 + $0x138] sm:$0xff]  ;;  %v128_v36 = vshrl.u32 %v127_v35, 7 }
  0x4f   :  { %167 = vmatpush1.msra.mxu0 %v87_v37  ;;  %703 = vmatprep.subr.mxu1 %v919_v0  ;;  %v306_v18 = vld [vmem:[#allocation7 + $0xa0] sm:$0xff]  ;;  %v324_v20 = vld [vmem:[#allocation7 + $0x130] sm:$0xff]  ;;  %v305_v21 = vld [vmem:[#allocation7 + $0x98] sm:$0xff] }
  0x50   :  { %168 = vmatprep.subr.mxu0 %v85_v39  ;;  %704 = vmatpush3.msra.mxu1 %v89_v41  ;;  %v290_v19 = vld [vmem:[#allocation7 + $0x20] sm:$0xff]  ;;  %v289_v22 = vld [vmem:[#allocation7 + $0x18] sm:$0xff]  ;;  %v323_v23 = vld [vmem:[#allocation7 + $0x128] sm:$0xff]  ;;  %v129_v37 = vsub.s32 0, %v128_v36  ;;  %v133_v39 = vsub.s32 1, %v128_v36 }
  0x51   :  { %169 = vmatpush1.msra.mxu0 %v84_v40  ;;  %705 = vmatprep.subr.mxu1 %v919_v0  ;;  %v304_v24 = vld [vmem:[#allocation7 + $0x90] sm:$0xff]  ;;  %v322_v26 = vld [vmem:[#allocation7 + $0x120] sm:$0xff]  ;;  %v303_v27 = vld [vmem:[#allocation7 + $0x88] sm:$0xff]  ;;  %v137_v40 = vsub.s32 2, %v128_v36 }
  0x52   :  { %170 = vmatprep.subr.mxu0 %v82_v42  ;;  %706 = vmatpush3.msra.mxu1 %v86_v44  ;;  %v288_v25 = vld [vmem:[#allocation7 + $0x10] sm:$0xff]  ;;  %v287_v28 = vld [vmem:[#allocation7 + $0x8] sm:$0xff]  ;;  %v321_v29 = vld [vmem:[#allocation7 + $0x118] sm:$0xff] }
  0x53   :  { %171 = vmatpush1.msra.mxu0 %v81_v43  ;;  %707 = vmatprep.subr.mxu1 %v919_v0  ;;  %v302_v30 = vld [vmem:[#allocation7 + $0x80] sm:$0xff]  ;;  %v320_v32 = vld [vmem:[#allocation7 + $0x110] sm:$0xff]  ;;  %v319_v33 = vld [vmem:[#allocation7 + $0x108] sm:$0xff] }
  0x54   :  { %172 = vmatprep.subr.mxu0 %v79_v45  ;;  %708 = vmatpush3.msra.mxu1 %v83_v47  ;;  %v286_v31 = vld [vmem:[#allocation7] sm:$0xff]  ;;  %v74_v38 = vld [vmem:[%s1035_s4] sm:$0x7] }
  0x55   :  { %173 = vmatpush1.msra.mxu0 %v78_v46  ;;  %709 = vmatprep.subr.mxu1 %v919_v0  ;;  %v318_v34 = vld [vmem:[#allocation7 + $0x100] sm:$0xff]  ;;  %v130_v41 = vrot.slane %v74_v38, %v129_v37  ;;  %v134_v42 = vrot.slane %v74_v38, %v133_v39  ;;  %v138_v43 = vrot.slane %v74_v38, %v137_v40 }
  0x56   :  { %207 = vmatmul.mubr.f32.vlgmr.msra.gmra.mxu0 %v77_v48  ;;  %710 = vmatpush3.msra.mxu1 %v80_v49 }
  0x57   :  { %610 = vmatprep.subr.mxu0 %v317_v50  ;;  %712 = vmatmul.mubr.f32.vlgmr.msra.gmra.mxu1 %v77_v48 }
  0x58   :  { %611 = vmatpush3.msra.mxu0 %v301_v51  ;;  %714 = vmatprep.subr.mxu1 %v919_v0 }
  0x59   :  { %612 = vmatprep.subr.mxu0 %v316_v52  ;;  %715 = vmatpush3.msra.mxu1 %v333_v54 }
  0x5a   :  { %613 = vmatpush3.msra.mxu0 %v300_v53  ;;  %716 = vmatprep.subr.mxu1 %v919_v0  ;;  %v496_v53 = vld [vmem:[#allocation8 + $0x78] sm:$0xff] }
  0x5b   :  { %614 = vmatprep.subr.mxu0 %v315_v55  ;;  %717 = vmatpush3.msra.mxu1 %v332_v57  ;;  %v495_v55 = vld [vmem:[#allocation8 + $0x70] sm:$0xff]  ;;  %v493_v57 = vld [vmem:[#allocation8 + $0x60] sm:$0xff] }
  0x5c   :  { %615 = vmatpush3.msra.mxu0 %v299_v56  ;;  %718 = vmatprep.subr.mxu1 %v919_v0  ;;  %v494_v56 = vld [vmem:[#allocation8 + $0x68] sm:$0xff] }
  0x5d   :  { %616 = vmatprep.subr.mxu0 %v314_v58  ;;  %719 = vmatpush3.msra.mxu1 %v331_v60  ;;  %v492_v58 = vld [vmem:[#allocation8 + $0x58] sm:$0xff]  ;;  %v490_v60 = vld [vmem:[#allocation8 + $0x48] sm:$0xff] }
  0x5e   :  { %617 = vmatpush3.msra.mxu0 %v298_v59  ;;  %720 = vmatprep.subr.mxu1 %v919_v0  ;;  %v491_v59 = vld [vmem:[#allocation8 + $0x50] sm:$0xff] }
  0x5f   :  { %618 = vmatprep.subr.mxu0 %v313_v61  ;;  %721 = vmatpush3.msra.mxu1 %v330_v63  ;;  %v489_v61 = vld [vmem:[#allocation8 + $0x40] sm:$0xff]  ;;  %v487_v63 = vld [vmem:[#allocation8 + $0x30] sm:$0xff] }
  0x60   :  { %619 = vmatpush3.msra.mxu0 %v297_v62  ;;  %722 = vmatprep.subr.mxu1 %v919_v0  ;;  %v488_v62 = vld [vmem:[#allocation8 + $0x38] sm:$0xff] }
  0x61   :  { %620 = vmatprep.subr.mxu0 %v312_v1  ;;  %746 = vmatprep.mubr.msk.f32.mxu1 %vm920_vm0, %v919_v0  ;;  %v486_v1 = vld [vmem:[#allocation8 + $0x28] sm:$0xff] }
  0x62   :  { %621 = vmatpush3.msra.mxu0 %v296_v2  ;;  %723 = vmatpush3.msra.mxu1 %v329_v5  ;;  %v485_v2 = vld [vmem:[#allocation8 + $0x20] sm:$0xff]  ;;  %v482_v5 = vld [vmem:[#allocation8 + $0x8] sm:$0xff] }
  0x63   :  { %622 = vmatprep.subr.mxu0 %v311_v3  ;;  %724 = vmatprep.subr.mxu1 %v919_v0  ;;  %v484_v3 = vld [vmem:[#allocation8 + $0x18] sm:$0xff] }
  0x64   :  { %623 = vmatpush3.msra.mxu0 %v295_v4  ;;  %725 = vmatpush3.msra.mxu1 %v328_v8  ;;  %v483_v4 = vld [vmem:[#allocation8 + $0x10] sm:$0xff] }
  0x65   :  { %624 = vmatprep.subr.mxu0 %v310_v6  ;;  %726 = vmatprep.subr.mxu1 %v919_v0  ;;  %v481_v6 = vld [vmem:[#allocation8] sm:$0xff] }
  0x66   :  { %625 = vmatpush3.msra.mxu0 %v294_v7  ;;  %727 = vmatpush3.msra.mxu1 %v327_v11 }
  0x67   :  { %626 = vmatprep.subr.mxu0 %v309_v9  ;;  %728 = vmatprep.subr.mxu1 %v919_v0 }
  0x68   :  { %627 = vmatpush3.msra.mxu0 %v293_v10  ;;  %729 = vmatpush3.msra.mxu1 %v326_v14  ;;  %v591_v10 = vld [vmem:[%s1035_s4 + $0x3] ss:$0 sm:$0xff] }
  0x69   :  { %628 = vmatprep.subr.mxu0 %v308_v12  ;;  %730 = vmatprep.subr.mxu1 %v919_v0 }
  0x6a   :  { %629 = vmatpush3.msra.mxu0 %v292_v13  ;;  %731 = vmatpush3.msra.mxu1 %v325_v17 }
  0x6b   :  { %630 = vmatprep.subr.mxu0 %v307_v15  ;;  %732 = vmatprep.subr.mxu1 %v919_v0 }
  0x6c   :  { %631 = vmatpush3.msra.mxu0 %v291_v16  ;;  %733 = vmatpush3.msra.mxu1 %v324_v20  ;;  %v592_v16 = vld [vmem:[%s1035_s4 + $0x4] ss:$0 sm:$0xff] }
  0x6d   :  { %632 = vmatprep.subr.mxu0 %v306_v18  ;;  %734 = vmatprep.subr.mxu1 %v919_v0 }
  0x6e   :  { %633 = vmatpush3.msra.mxu0 %v290_v19  ;;  %735 = vmatpush3.msra.mxu1 %v323_v23 }
  0x6f   :  { %634 = vmatprep.subr.mxu0 %v305_v21  ;;  %736 = vmatprep.subr.mxu1 %v919_v0 }
  0x70   :  { %635 = vmatpush3.msra.mxu0 %v289_v22  ;;  %737 = vmatpush3.msra.mxu1 %v322_v26 }
  0x71   :  { %636 = vmatprep.subr.mxu0 %v304_v24  ;;  %738 = vmatprep.subr.mxu1 %v919_v0 }
  0x72   :  { %637 = vmatpush3.msra.mxu0 %v288_v25  ;;  %739 = vmatpush3.msra.mxu1 %v321_v29 }
  0x73   :  { %638 = vmatprep.subr.mxu0 %v303_v27  ;;  %740 = vmatprep.subr.mxu1 %v919_v0 }
  0x74   :  { %639 = vmatpush3.msra.mxu0 %v287_v28  ;;  %741 = vmatpush3.msra.mxu1 %v320_v32 }
  0x75   :  { %640 = vmatprep.subr.mxu0 %v302_v30  ;;  %742 = vmatprep.subr.mxu1 %v919_v0 }
  0x76   :  { %641 = vmatpush3.msra.mxu0 %v286_v31  ;;  %743 = vmatpush3.msra.mxu1 %v319_v33 }
  0x77   :  { %749 = vmatprep.subr.mxu0 %v919_v0  ;;  %744 = vmatprep.subr.mxu1 %v919_v0 }
  0x78   :  { %745 = vmatpush3.msra.mxu1 %v318_v34 }
 0x116   :  { %v208_v44 = vpop.f32.mrf.mxu0 }
 0x117   :  { %v209_v45 = vadd.f32 %v208_v44, %v130_v41  ;;  %v279_v47 = vpop.f32.mrf.mxu1 }
 0x118   :  { %v210_v46 = vpop.f32.mrf.mxu0  ;;  %v280_v49 = vadd.f32 %v279_v47, %v138_v43 }
 0x119   :  { %v211_v48 = vadd.f32 %v210_v46, %v134_v42  ;;  %795 = vtanh.f32 %v209_v45  ;;  %v713_v50 = vpop.f32.mrf.mxu1 }
 0x11b   :  { %797 = vtanh.f32 %v211_v48 }
 0x11c   :  { %799 = vtanh.f32 %v280_v49 }
 0x126   :  { %v796_v51 = vpop.eup %795 }
 0x128   :  { %v798_v52 = vpop.eup %797 }
 0x129   :  { %v800_v54 = vpop.eup %799  ;;  %404 = vmatprep.mubr.f32.mxu0 %v798_v52 }
 0x12a   :  { %405 = vmatmul.mubr.f32.vlgmr.msra.gmra.mxu0 %v796_v51  ;;  %747 = vmatmul.mubr.f32.vlgmr.msra.gmra.mxu1 %v800_v54 }
 0x12b   :  { %750 = vmatpush3.msra.mxu0 %v496_v53  ;;  %781 = vmatprep.mubr.msk.f32.mxu0 %vm920_vm0, %v919_v0 }
 0x12c   :  { %751 = vmatprep.subr.mxu0 %v919_v0 }
 0x12d   :  { %752 = vmatpush3.msra.mxu0 %v495_v55 }
 0x12e   :  { %753 = vmatprep.subr.mxu0 %v919_v0 }
 0x12f   :  { %754 = vmatpush3.msra.mxu0 %v494_v56 }
 0x130   :  { %755 = vmatprep.subr.mxu0 %v919_v0 }
 0x131   :  { %756 = vmatpush3.msra.mxu0 %v493_v57 }
 0x132   :  { %757 = vmatprep.subr.mxu0 %v919_v0 }
 0x133   :  { %758 = vmatpush3.msra.mxu0 %v492_v58 }
 0x134   :  { %759 = vmatprep.subr.mxu0 %v919_v0 }
 0x135   :  { %760 = vmatpush3.msra.mxu0 %v491_v59 }
 0x136   :  { %761 = vmatprep.subr.mxu0 %v919_v0 }
 0x137   :  { %762 = vmatpush3.msra.mxu0 %v490_v60 }
 0x138   :  { %763 = vmatprep.subr.mxu0 %v919_v0 }
 0x139   :  { %764 = vmatpush3.msra.mxu0 %v489_v61 }
 0x13a   :  { %765 = vmatprep.subr.mxu0 %v919_v0 }
 0x13b   :  { %766 = vmatpush3.msra.mxu0 %v488_v62 }
 0x13c   :  { %767 = vmatprep.subr.mxu0 %v919_v0 }
 0x13d   :  { %768 = vmatpush3.msra.mxu0 %v487_v63 }
 0x13e   :  { %769 = vmatprep.subr.mxu0 %v919_v0 }
 0x13f   :  { %770 = vmatpush3.msra.mxu0 %v486_v1 }
 0x140   :  { %771 = vmatprep.subr.mxu0 %v919_v0 }
 0x141   :  { %772 = vmatpush3.msra.mxu0 %v485_v2 }
 0x142   :  { %773 = vmatprep.subr.mxu0 %v919_v0 }
 0x143   :  { %774 = vmatpush3.msra.mxu0 %v484_v3 }
 0x144   :  { %775 = vmatprep.subr.mxu0 %v919_v0 }
 0x145   :  { %776 = vmatpush3.msra.mxu0 %v483_v4 }
 0x146   :  { %777 = vmatprep.subr.mxu0 %v919_v0 }
 0x147   :  { %778 = vmatpush3.msra.mxu0 %v482_v5 }
 0x148   :  { %779 = vmatprep.subr.mxu0 %v919_v0 }
 0x149   :  { %780 = vmatpush3.msra.mxu0 %v481_v6 }
 0x1ea   :  { %v642_v7 = vpop.f32.mrf.mxu0  ;;  %v476_v8 = vpop.f32.mrf.mxu1 }
 0x1ec   :  { %v643_v9 = vpop.f32.mrf.mxu0  ;;  %v748_v11 = vpop.f32.mrf.mxu1 }
 0x1ed   :  { %v644_v12 = vadd.f32 %v643_v9, %v642_v7 }
 0x1ef   :  { %v407_v13 = vadd.f32 %v644_v12, %v591_v10 }
 0x1f1   :  { %v477_v14 = vadd.f32 %v476_v8, %v407_v13 }
 0x1f3   :  { %801 = vtanh.f32 %v477_v14 }
 0x200   :  { %v802_v15 = vpop.eup %801 }
 0x201   :  { %782 = vmatmul.mubr.f32.vlgmr.msra.gmra.mxu0 %v802_v15 }
 0x2c1   :  { %v569_v0 = vpop.f32.mrf.mxu0 }
 0x2c2   :  { %v570_v17 = vadd.f32 %v592_v16, %v569_v0 }
 0x2c3   :  { %v783_v18 = vpop.f32.mrf.mxu0 }
 0x2c4   :  { %573 = vst [vmem:[#allocation10] sm:$0xff] %v570_v17 }
 0x2c5   :  { %894 = shalt.err (!%p891_p10)
}
 0x2c6   :  { %583 = dma.vmem_to_hbm [thread:$0]  %s581_s20, 128, %s1036_s5, [#allocation4]  }
 0x2c7   :  { %909 = dma.done.wait [#allocation4], 128  }
 0x2c8   :  { %910 = vsyncadd [#allocation4], 4294967168 }
 0x2c9   :  { %587 = vsyncpa [#allocation3], 1 }
 0x2ca   :  { %588 = vsyncpa [#allocation6], 1 }
 0x2cb   :  { %589 = vsyncpa [#allocation9], 1 }
 0x2cc   :  { %590 = vsyncpa [#allocation4], 1 }

</bundles_post_ra>
